<compile_context>
chip_gen: v7x
topology: tpu7x:2x2x1
jax: 0.10.0
libtpu: 0.0.40
codegen_flags: <defaults>
</compile_context>

<pallas_src>
import functools

import jax
import jax.numpy as jnp
from jax.experimental import pallas as pl
from jax.experimental.pallas import tpu as pltpu

_LANES = 128
_MAX_BLOCK_ROWS = 512   # (512, 128) f32 tile ~ 256 KiB; 2 inputs x 2 bufs ~ 1 MiB VMEM


def _bce_plus_aux_kernel(aux_ref, pred_ref, targ_ref, out_ref, acc_ref, *, inv_n):
    """Partial BCE sum over one (TR, 128) tile; finalize mean + aux on last step."""
    i = pl.program_id(0)

    @pl.when(i == 0)
    def _():
        acc_ref[...] = jnp.zeros_like(acc_ref)

    # In-kernel cast: inputs may arrive as bf16 / bool / int; compute in f32.
    p = pred_ref[...].astype(jnp.float32)
    t = targ_ref[...].astype(jnp.float32)

    # torch.nn.BCELoss clamps each log term at -100 (handles p == 0 or 1).
    log_p = jnp.maximum(jnp.log(p), -100.0)
    log_1mp = jnp.maximum(jnp.log(1.0 - p), -100.0)
    per_elem = -(t * log_p + (1.0 - t) * log_1mp)

    acc_ref[...] += jnp.sum(per_elem)

    @pl.when(i == pl.num_programs(0) - 1)
    def _():
        # mean over the TRUE batch size + sum of auxiliary losses (SMEM scalar).
        out_ref[...] = acc_ref[...] * inv_n + aux_ref[0]


def criterion_with_loss(pred, target, aux_losses, *, max_block_rows=_MAX_BLOCK_ROWS):
    """CriterionWithLoss.forward: BCELoss(mean)(pred, target) + sum(aux_losses)."""
    assert pred.shape == target.shape
    B = int(pred.size)                      # true element count -> mean divisor

    pred_flat = pred.reshape(-1)
    targ_flat = target.reshape(-1)

    # Pack the batch sublane-dense: (rows, 128), rows a multiple of 8 and of
    # the chosen row-block size so every block is (8,128)-aligned.
    rows = -(-B // _LANES)                  # ceil(B / 128)
    rows = -(-rows // 8) * 8                # pad to sublane multiple of 8
    block_rows = min(max_block_rows, rows)
    rows = -(-rows // block_rows) * block_rows
    padded = rows * _LANES

    # Pad with pred=1, target=1: contribution is exactly 0
    #   (t*log p = 1*log 1 = 0 ; (1-t)*clamp(log(1-p)) = 0*(-100) = 0).
    pad_p = jnp.ones((padded - B,), dtype=pred_flat.dtype)
    pad_t = jnp.ones((padded - B,), dtype=targ_flat.dtype)
    pred2 = jnp.concatenate([pred_flat, pad_p]).reshape(rows, _LANES)
    targ2 = jnp.concatenate([targ_flat, pad_t]).reshape(rows, _LANES)

    # Auxiliary losses collapsed on the scalar path; ride in via SMEM.
    aux_sum = jnp.sum(aux_losses.astype(jnp.float32)).reshape(1)

    grid = (rows // block_rows,)
    kernel = functools.partial(_bce_plus_aux_kernel, inv_n=1.0 / B)

    out = pl.pallas_call(
        kernel,
        out_shape=jax.ShapeDtypeStruct((1, 1), jnp.float32),
        grid=grid,
        in_specs=[
            pl.BlockSpec(memory_space=pltpu.MemorySpace.SMEM),        # aux_sum (1,)
            pl.BlockSpec((block_rows, _LANES), lambda i: (i, 0)),     # pred tile
            pl.BlockSpec((block_rows, _LANES), lambda i: (i, 0)),     # target tile
        ],
        out_specs=pl.BlockSpec((1, 1), lambda i: (0, 0)),
        scratch_shapes=[pltpu.VMEM((1, 1), jnp.float32)],
        compiler_params=pltpu.CompilerParams(
            dimension_semantics=("arbitrary",)),                      # reduction axis
    )(aux_sum, pred2, targ2)
    return out[0, 0]


def _reference(pred, target, aux_losses):
    """Pure-JAX reference matching torch.nn.BCELoss(mean) + sum(aux)."""
    p = pred.astype(jnp.float32).reshape(-1)
    t = target.astype(jnp.float32).reshape(-1)
    log_p = jnp.maximum(jnp.log(p), -100.0)
    log_1mp = jnp.maximum(jnp.log(1.0 - p), -100.0)
    bce = jnp.mean(-(t * log_p + (1.0 - t) * log_1mp))
    return bce + jnp.sum(aux_losses.astype(jnp.float32))


if __name__ == "__main__":
    key = jax.random.PRNGKey(0)
    k1, k2, k3, k4, k5, k6 = jax.random.split(key, 6)

    # --- test 1: f32 inputs, B not a multiple of 128 (exercises tail padding) ---
    B1, K1 = 300, 3
    pred1 = jax.nn.sigmoid(jax.random.normal(k1, (B1,), dtype=jnp.float32))
    targ1 = jax.random.bernoulli(k2, p=0.5, shape=(B1,)).astype(jnp.float32)
    aux1 = jnp.abs(jax.random.normal(k3, (K1,), dtype=jnp.float32)) * 0.01

    out1 = jax.block_until_ready(criterion_with_loss(pred1, targ1, aux1))
    ref1 = _reference(pred1, targ1, aux1)
    assert jnp.allclose(out1, ref1, rtol=1e-5, atol=1e-5), (out1, ref1)

    # --- test 2: bf16 inputs + multi-step grid (exercises accumulator & in-kernel cast) ---
    B2, K2 = 2048, 2
    pred2 = jax.nn.sigmoid(jax.random.normal(k4, (B2,), dtype=jnp.float32)).astype(jnp.bfloat16)
    targ2 = jax.random.bernoulli(k5, p=0.5, shape=(B2,)).astype(jnp.bfloat16)
    aux2 = jnp.abs(jax.random.normal(k6, (K2,), dtype=jnp.float32)) * 0.01

    out2 = jax.block_until_ready(
        criterion_with_loss(pred2, targ2, aux2, max_block_rows=8))   # grid of 2 steps
    ref2 = _reference(pred2, targ2, aux2)
    assert jnp.allclose(out2, ref2, rtol=1e-4, atol=1e-5), (out2, ref2)

    print("KERNEL_OK")
</pallas_src>

<mosaic_0001>
module attributes {stable_mosaic.version = 11 : i64} {
  func.func @_bce_plus_aux_kernel(%arg0: i32, %arg1: memref<1xf32, #tpu.memory_space<smem>>, %arg2: memref<8x128xf32, #tpu.memory_space<vmem>>, %arg3: memref<8x128xf32, #tpu.memory_space<vmem>>, %arg4: memref<1x1xf32, #tpu.memory_space<vmem>>, %arg5: memref<1x1xf32, #tpu.memory_space<vmem>>) attributes {dimension_semantics = [#tpu.dimension_semantics<arbitrary>], iteration_bounds = array<i64: 1>, scalar_prefetch = 0 : i64, scratch_operands = 1 : i64, tpu.core_type = #tpu.core_type<tc>, window_params = [{transform_indices = @transform_0, window_bounds = array<i64: 1>}, {transform_indices = @transform_1, window_bounds = array<i64: 8, 128>}, {transform_indices = @transform_2, window_bounds = array<i64: 8, 128>}, {pipeline_mode = #tpu.pipeline_mode<synchronous>, transform_indices = @transform_3, window_bounds = array<i64: 1, 1>}]} {
    %c0_i32 = arith.constant 0 : i32
    %0 = arith.cmpi eq, %arg0, %c0_i32 : i32
    %1 = arith.extui %0 : i1 to i32
    %c0_i32_0 = arith.constant 0 : i32
    %2 = arith.cmpi ne, %1, %c0_i32_0 : i32
    scf.if %2 {
      %cst_15 = arith.constant 0.000000e+00 : f32
      %31 = vector.broadcast %cst_15 : f32 to vector<1x1xf32>
      %c0_16 = arith.constant 0 : index
      %c0_17 = arith.constant 0 : index
      %32 = vector.load %arg5[%c0_16, %c0_17] : memref<1x1xf32, #tpu.memory_space<vmem>>, vector<1x1xf32>
      tpu.vector_store %arg5[%c0_16, %c0_17], %31 {strides = array<i32>} : memref<1x1xf32, #tpu.memory_space<vmem>>, vector<1x1xf32>,
    } else {
    }
    %c0 = arith.constant 0 : index
    %c0_1 = arith.constant 0 : index
    %3 = vector.load %arg2[%c0, %c0_1] : memref<8x128xf32, #tpu.memory_space<vmem>>, vector<8x128xf32>
    %c0_2 = arith.constant 0 : index
    %c0_3 = arith.constant 0 : index
    %4 = vector.load %arg3[%c0_2, %c0_3] : memref<8x128xf32, #tpu.memory_space<vmem>>, vector<8x128xf32>
    %5 = math.log %3 : vector<8x128xf32>
    %cst = arith.constant -1.000000e+02 : f32
    %6 = vector.broadcast %cst : f32 to vector<8x128xf32>
    %7 = arith.maximumf %5, %6 : vector<8x128xf32>
    %cst_4 = arith.constant 1.000000e+00 : f32
    %8 = vector.broadcast %cst_4 : f32 to vector<8x128xf32>
    %9 = arith.subf %8, %3 : vector<8x128xf32>
    %10 = math.log %9 : vector<8x128xf32>
    %cst_5 = arith.constant -1.000000e+02 : f32
    %11 = vector.broadcast %cst_5 : f32 to vector<8x128xf32>
    %12 = arith.maximumf %10, %11 : vector<8x128xf32>
    %13 = arith.mulf %4, %7 : vector<8x128xf32>
    %cst_6 = arith.constant 1.000000e+00 : f32
    %14 = vector.broadcast %cst_6 : f32 to vector<8x128xf32>
    %15 = arith.subf %14, %4 : vector<8x128xf32>
    %16 = arith.mulf %15, %12 : vector<8x128xf32>
    %17 = arith.addf %13, %16 : vector<8x128xf32>
    %cst_7 = arith.constant 0.000000e+00 : f32
    %18 = vector.broadcast %cst_7 : f32 to vector<8x128xf32>
    %19 = arith.subf %18, %17 : vector<8x128xf32>
    %c0_8 = arith.constant 0 : index
    %c0_9 = arith.constant 0 : index
    %20 = vector.load %arg5[%c0_8, %c0_9] : memref<1x1xf32, #tpu.memory_space<vmem>>, vector<1x1xf32>
    %21 = vector.shape_cast %19 : vector<8x128xf32> to vector<1x8x128xf32>
    %cst_10 = arith.constant dense<0.000000e+00> : vector<1xf32>
    %22 = vector.multi_reduction <add>, %21, %cst_10 [1, 2] : vector<1x8x128xf32> to vector<1xf32>
    %23 = vector.shape_cast %22 : vector<1xf32> to vector<1x1x1xf32>
    %24 = vector.extract %23[0, 0, 0] : f32 from vector<1x1x1xf32>
    %25 = vector.broadcast %24 : f32 to vector<1x1xf32>
    %26 = arith.addf %20, %25 : vector<1x1xf32>
    %c0_11 = arith.constant 0 : index
    %c0_12 = arith.constant 0 : index
    %27 = vector.load %arg5[%c0_11, %c0_12] : memref<1x1xf32, #tpu.memory_space<vmem>>, vector<1x1xf32>
    tpu.vector_store %arg5[%c0_11, %c0_12], %26 {strides = array<i32>} : memref<1x1xf32, #tpu.memory_space<vmem>>, vector<1x1xf32>,
    %c0_i32_13 = arith.constant 0 : i32
    %28 = arith.cmpi eq, %arg0, %c0_i32_13 : i32
    %29 = arith.extui %28 : i1 to i32
    %c0_i32_14 = arith.constant 0 : i32
    %30 = arith.cmpi ne, %29, %c0_i32_14 : i32
    scf.if %30 {
      %c0_15 = arith.constant 0 : index
      %c0_16 = arith.constant 0 : index
      %31 = vector.load %arg5[%c0_15, %c0_16] : memref<1x1xf32, #tpu.memory_space<vmem>>, vector<1x1xf32>
      %cst_17 = arith.constant 0.00333333341 : f32
      %32 = vector.broadcast %cst_17 : f32 to vector<1x1xf32>
      %33 = arith.mulf %31, %32 : vector<1x1xf32>
      %c0_18 = arith.constant 0 : index
      %34 = memref.load %arg1[%c0_18] : memref<1xf32, #tpu.memory_space<smem>>
      %35 = vector.broadcast %34 : f32 to vector<1x1xf32>
      %36 = arith.addf %33, %35 : vector<1x1xf32>
      %c0_19 = arith.constant 0 : index
      %c0_20 = arith.constant 0 : index
      %37 = vector.load %arg4[%c0_19, %c0_20] : memref<1x1xf32, #tpu.memory_space<vmem>>, vector<1x1xf32>
      tpu.vector_store %arg4[%c0_19, %c0_20], %36 {strides = array<i32>} : memref<1x1xf32, #tpu.memory_space<vmem>>, vector<1x1xf32>,
    } else {
    }
    return
  }
  func.func @transform_0(%arg0: i32) -> i32 {
    %c0_i32 = arith.constant 0 : i32
    %c0_i32_0 = arith.constant 0 : i32
    return %c0_i32 : i32
  }
  func.func @transform_1(%arg0: i32) -> (i32, i32) {
    %c0_i32 = arith.constant 0 : i32
    %c0_i32_0 = arith.constant 0 : i32
    return %arg0, %c0_i32 : i32, i32
  }
  func.func @transform_2(%arg0: i32) -> (i32, i32) {
    %c0_i32 = arith.constant 0 : i32
    %c0_i32_0 = arith.constant 0 : i32
    return %arg0, %c0_i32 : i32, i32
  }
  func.func @transform_3(%arg0: i32) -> (i32, i32) {
    %c0_i32 = arith.constant 0 : i32
    %c0_i32_0 = arith.constant 0 : i32
    %c0_i32_1 = arith.constant 0 : i32
    return %c0_i32, %c0_i32_0 : i32, i32
  }
}

</mosaic_0001>

<bundles_post_ra>
// kernel: tpu_custom_call.1
= control target key start
LH: loop header
LB: loop body
LE: loop exit
PB: predicated region body
PF: predicated region fallthrough
CT: control target
= control target key end

     0   :  { %9 = vsyncpa [#allocation5], 0  ;;  %s247_s0 = inlined_call_operand.<no memory space> [shape: f32[1], index: 0, kind: input, shape index: {}]   ;;  %s248_s1 = inlined_call_operand.hbm [shape: f32[8,128], index: 1, kind: input, shape index: {}]   ;;  %s249_s2 = inlined_call_operand.hbm [shape: f32[8,128], index: 2, kind: input, shape index: {}]   ;;  %s250_s3 = inlined_call_operand.hbm [shape: f32[1,1], index: 3, kind: output, shape index: {}]  }
   0x1   :  { %10 = vsyncpa [#allocation8], 0 }
   0x2   :  { %11 = vsyncpa [#allocation6], 0  ;;  %s181_s12 = smov [#allocation4]   ;;  %s182_s14 = smov [#allocation7]  }
   0x3   :  { %s20_s13 = sshll.u32 %s181_s12, 4  ;;  %s30_s15 = sshll.u32 %s182_s14, 4  ;;  %s21_s13 = int_to_ptr.vmem [resolvable:$true] %s20_s13  ;;  %s31_s15 = int_to_ptr.vmem [resolvable:$true] %s30_s15 }
   0x4   :  { %s109_s18 = scalar_lea.hbm %s248_s1, 128 }
   0x5   :  { %p110_p0 = scmp.ne.s32.totalorder %s248_s1, %s109_s18  ;;  %p113_p1 = scmp.lt.u32.totalorder %s109_s18, %s248_s1 }
   0x7   :  { %p115_p2 = pnand %p113_p1, %p110_p0 }
   0x9   :  { %118 = shalt.err (!%p115_p2)
}
   0xa   :  { %s119_s23 = scalar_lea.vmem %s21_s13, 128  ;;  %p124_p4 = scmp.lt.s32.totalorder %s21_s13, %s21_s13 }
   0xb   :  { %p120_p3 = scmp.ne.s32.totalorder %s21_s13, %s119_s23  ;;  %p125_p5 = scmp.lt.s32.totalorder %s119_s23, %s119_s23 }
   0xd   :  { %p126_p6 = por %p125_p5, %p124_p4 }
   0xf   :  { %p127_p7 = pnand %p126_p6, %p120_p3 }
  0x11   :  { %130 = shalt.err (!%p127_p7)
}
  0x12   :  { %23 = dma.hbm_to_vmem [thread:$0]  %s248_s1, 128, %s21_s13, [#allocation5]  }
  0x13   :  { %s131_s28 = scalar_lea.hbm %s249_s2, 128 }
  0x14   :  { %p132_p8 = scmp.ne.s32.totalorder %s249_s2, %s131_s28  ;;  %p135_p9 = scmp.lt.u32.totalorder %s131_s28, %s249_s2 }
  0x16   :  { %p137_p10 = pnand %p135_p9, %p132_p8 }
  0x18   :  { %140 = shalt.err (!%p137_p10)
}
  0x19   :  { %s141_s6 = scalar_lea.vmem %s31_s15, 128  ;;  %p146_p12 = scmp.lt.s32.totalorder %s31_s15, %s31_s15 }
  0x1a   :  { %p142_p11 = scmp.ne.s32.totalorder %s31_s15, %s141_s6  ;;  %p147_p13 = scmp.lt.s32.totalorder %s141_s6, %s141_s6 }
  0x1c   :  { %p148_p0 = por %p147_p13, %p146_p12 }
  0x1e   :  { %p149_p1 = pnand %p148_p0, %p142_p11 }
  0x20   :  { %152 = shalt.err (!%p149_p1)
}
  0x21   :  { %33 = dma.hbm_to_vmem [thread:$0]  %s249_s2, 128, %s31_s15, [#allocation8]  }
  0x22   :  { %175 = dma.done.wait [#allocation5], 128  }
  0x23   :  { %176 = vsyncadd [#allocation5], 4294967168 }
  0x24   :  { %177 = dma.done.wait [#allocation8], 128  }
  0x25   :  { %178 = vsyncadd [#allocation8], 4294967168  ;;  %v46_v0 = vld [vmem:[#allocation4] sm:$0xff]  ;;  %v47_v3 = vld [vmem:[#allocation7] sm:$0xff]  ;;  %vm44_vm0 = vcmask 0   ;;  %v183_v14 = vmov 0.0   ;;  %v80_v26 = vstv %s247_s0 }
  0x26   :  { %105 = vlog2.f32 %v46_v0  ;;  %v51_v1 = vsub.f32 1.0, %v46_v0  ;;  %v56_v8 = vsub.f32 1.0, %v47_v3  ;;  %45 = vst.msk [vmem:[#allocation2] sm:$0x1] %vm44_vm0, %v183_v14  ;;  %s184_s10 = smov [#allocation9]  }
  0x27   :  { %s89_s11 = sshll.u32 %s184_s10, 4  ;;  %s90_s11 = int_to_ptr.vmem [resolvable:$true] %s89_s11 }
  0x28   :  { %107 = vlog2.f32 %v51_v1  ;;  %s153_s12 = scalar_lea.vmem %s90_s11, 16  ;;  %s157_s13 = scalar_lea.vmem %s90_s11, 32 }
  0x29   :  { %p154_p2 = scmp.ne.s32.totalorder %s90_s11, %s153_s12  ;;  %p158_p3 = scmp.lt.s32.totalorder %s90_s11, %s90_s11 }
  0x2a   :  { %p159_p4 = scmp.lt.s32.totalorder %s157_s13, %s153_s12 }
  0x2c   :  { %p160_p5 = por %p159_p4, %p158_p3 }
  0x2d   :  { %v60_v22 = vld [vmem:[#allocation2] sm:$0x1] }
  0x2e   :  { %p161_p6 = pnand %p160_p5, %p154_p2 }
  0x30   :  { %v106_v2 = vpop.eup %105 }
  0x31   :  { %v49_v4 = vmul.f32 0.6931472, %v106_v2 }
  0x32   :  { %v108_v5 = vpop.eup %107 }
  0x33   :  { %v50_v6 = vmax.f32 %v49_v4, -100.0  ;;  %v53_v7 = vmul.f32 0.6931472, %v108_v5 }
  0x35   :  { %v54_v9 = vmax.f32 %v53_v7, -100.0  ;;  %v55_v10 = vmul.f32 %v50_v6, %v47_v3 }
  0x37   :  { %v57_v11 = vmul.f32 %v56_v8, %v54_v9 }
  0x39   :  { %v58_v12 = vadd.f32 %v57_v11, %v55_v10 }
  0x3b   :  { %v59_v13 = vsub.f32 0.0, %v58_v12 }
  0x3d   :  { %61 = vadd.xlane.f32.xlu0 %v59_v13 }
  0xca   :  { %v62_v15 = vpop.xlane.xlu0 %61 }
  0xcb   :  { %v63_v16 = vrot.slane %v62_v15, 4 }
  0xcd   :  { %v64_v17 = vadd.f32 %v63_v16, %v62_v15 }
  0xcf   :  { %v65_v18 = vrot.slane %v64_v17, 2 }
  0xd1   :  { %v66_v19 = vadd.f32 %v65_v18, %v64_v17 }
  0xd3   :  { %v67_v20 = vrot.slane %v66_v19, 1 }
  0xd5   :  { %v68_v21 = vadd.f32 %v67_v20, %v66_v19 }
  0xd7   :  { %99 = vpush %v68_v21 }
 0x108   :  { %s100_s2 = spop %99 }
 0x109   :  { %v70_v23 = vstv %s100_s2 }
 0x10a   :  { %v71_v24 = vadd.f32 %v70_v23, %v60_v22 }
 0x10c   :  { %73 = vst.msk [vmem:[#allocation2] sm:$0x1] %vm44_vm0, %v71_v24 }
 0x113   :  { %v77_v25 = vld [vmem:[#allocation2] sm:$0x1] }
 0x114   :  { %v78_v27 = vmul.f32 0.0033333334, %v77_v25 }
 0x116   :  { %v81_v28 = vadd.f32 %v80_v26, %v78_v27 }
 0x118   :  { %82 = vst.msk [vmem:[#allocation9] sm:$0x1] %vm44_vm0, %v81_v28 }
 0x119   :  { %164 = shalt.err (!%p161_p6)
}
 0x11a   :  { %s165_s16 = scalar_lea.hbm %s250_s3, 16 }
 0x11b   :  { %p166_p7 = scmp.ne.s32.totalorder %s250_s3, %s165_s16  ;;  %p169_p8 = scmp.lt.u32.totalorder %s165_s16, %s250_s3 }
 0x11d   :  { %p171_p9 = pnand %p169_p8, %p166_p7 }
 0x11f   :  { %174 = shalt.err (!%p171_p9)
}
 0x120   :  { %92 = dma.vmem_to_hbm [thread:$0]  %s90_s11, 16, %s250_s3, [#allocation6]  }
 0x121   :  { %179 = dma.done.wait [#allocation6], 16  }
 0x122   :  { %180 = vsyncadd [#allocation6], 4294967280 }
 0x123   :  { %96 = vsyncpa [#allocation5], 1 }
 0x124   :  { %97 = vsyncpa [#allocation8], 1 }
 0x125   :  { %98 = vsyncpa [#allocation6], 1 }

</bundles_post_ra>
